<compile_context>
chip_gen: v5e
topology: v5e:2x2
jax: 0.10.0
libtpu: 0.0.40
codegen_flags: <defaults>
</compile_context>

<pallas_src>
import functools

import jax
import jax.numpy as jnp
from jax import lax
from jax.experimental import pallas as pl
from jax.experimental.pallas import tpu as pltpu


def _biaffine_kernel(x_ref, wm_ref, wr_ref, y_ref, o_ref, xw_ref, col_ref,
                     *, n_in, n_out, bias_x, bias_y, mm_dtype):
    """One (b, i, j) grid step.

    x_ref:  [tsx, n_in]            wm_ref: [n_out, n_in, J]
    wr_ref: [n_out, 1, J]          y_ref:  [tsy, n_in]
    o_ref:  [n_out, tsx, tsy]
    xw_ref: [n_out, tsx, n_in]     VMEM cache, valid across the gy axis
    col_ref:[tsx, n_out]  (f32)    cached bias_y rank-1 column term
    """
    j = pl.program_id(2)

    # Recompute the first matmul only when entering a new (b, i): the gy axis
    # is innermost and "arbitrary", so the scratch cache persists across j.
    @pl.when(j == 0)
    def _fill_cache():
        x = x_ref[...]
        for o in range(n_out):
            # Single full-width MXU call over all J = n_in + bias_y columns
            # (fuses the bias_y column matmul); f32 accumulation.
            xw_full = jnp.dot(x, wm_ref[o], preferred_element_type=jnp.float32)
            if bias_x:
                # Folded bias_x ones-column: add the W row term (this also
                # carries the bias_x/bias_y corner scalar in the last column).
                xw_full = xw_full + wr_ref[o].astype(jnp.float32)
            xw_ref[o] = xw_full[:, :n_in].astype(mm_dtype)
            if bias_y:
                col_ref[:, o:o + 1] = xw_full[:, n_in:n_in + 1]

    y = y_ref[...]
    for o in range(n_out):
        # Transpose-free second matmul: contract last dims of xw and y.
        s = lax.dot_general(
            xw_ref[o], y,
            dimension_numbers=(((1,), (1,)), ((), ())),
            preferred_element_type=jnp.float32,
        )
        if bias_y:
            s = s + col_ref[:, o:o + 1]      # rank-1 column term, f32 broadcast
        o_ref[o] = s.astype(o_ref.dtype)


def _round_up(v, m):
    return ((v + m - 1) // m) * m


def _tile_and_pad(extent, target, granule, preferred=()):
    """Return (tile, padded_extent): tile divides padded_extent, tile <= target,
    and tile is a multiple of `granule` (or the full extent for tiny shapes)."""
    if extent <= granule:
        return extent, extent                # tiny: one full-extent block
    padded = _round_up(extent, granule)
    if padded <= target:
        return padded, padded                # one aligned block
    for p in preferred:                      # MXU-friendly sizes first
        if p <= target and padded % p == 0:
            return p, padded
    t = (target // granule) * granule
    while t > granule and padded % t != 0:
        t -= granule
    return t, padded


def biaffine_forward(x, y, weight, *, bias_x=True, bias_y=False, out_dtype=None):
    """x: [B, Sx, n_in], y: [B, Sy, n_in], weight: [n_out, n_in+bias_x, n_in+bias_y]."""
    B, Sx, n_in = x.shape
    By, Sy, n_in_y = y.shape
    n_out, I, J = weight.shape
    assert B == By and n_in == n_in_y
    assert I == n_in + int(bias_x) and J == n_in + int(bias_y)
    out_dtype = x.dtype if out_dtype is None else jnp.dtype(out_dtype)

    # Pre-split W in the wrapper (no per-step in-kernel slicing of W).
    w_main = weight[:, :n_in, :]                                  # [n_out, n_in, J]
    if bias_x:
        w_row = weight[:, n_in:n_in + 1, :]                       # [n_out, 1, J]
    else:
        w_row = jnp.zeros((n_out, 1, J), dtype=weight.dtype)      # unused in kernel

    # Tile choice: Sy is the lane-dense output dim (multiples of 128, up to
    # 1024); Sx is the sublane dim (8-aligned, 256/512 preferred for the
    # v6e/v7x 256x256 MXU).
    tsx, Sx_pad = _tile_and_pad(Sx, 512, 8, preferred=(512, 256, 128))
    tsy, Sy_pad = _tile_and_pad(Sy, 1024, 128, preferred=(1024, 512, 256))
    gx, gy = Sx_pad // tsx, Sy_pad // tsy

    # v7x has 2 TensorCores: make sure at least one parallel axis has extent>=2
    # (the arbitrary gy axis cannot be sharded).
    if B == 1 and gx == 1 and tsx >= 16 and tsx % 16 == 0:
        tsx //= 2
        gx = Sx_pad // tsx

    if Sx_pad != Sx:
        x = jnp.pad(x, ((0, 0), (0, Sx_pad - Sx), (0, 0)))
    if Sy_pad != Sy:
        y = jnp.pad(y, ((0, 0), (0, Sy_pad - Sy), (0, 0)))

    # For bf16 inputs the cached xw is rounded to bf16 before the second matmul
    # (one extra rounding vs. an end-to-end f32 reference); f32 stays f32.
    mm_dtype = jnp.float32 if x.dtype == jnp.float32 else x.dtype

    # Note: for very large n_out * n_in the resident weight block + xw cache
    # could exceed VMEM; an n_out-chunked grid axis would be needed then
    # (typical parser dims keep this well under a few MiB).
    kernel = functools.partial(
        _biaffine_kernel, n_in=n_in, n_out=n_out,
        bias_x=bool(bias_x), bias_y=bool(bias_y), mm_dtype=mm_dtype)

    itemsize = jnp.dtype(x.dtype).itemsize
    out_itemsize = jnp.dtype(out_dtype).itemsize
    mm_itemsize = jnp.dtype(mm_dtype).itemsize

    # Double-buffered blocks + resident scratch + f32 intermediates.
    blk_bytes = (
        2 * itemsize * (tsx * n_in + tsy * n_in)            # x, y blocks
        + 2 * itemsize * n_out * (n_in * J + J)             # w_main, w_row
        + 2 * out_itemsize * n_out * tsx * tsy              # output block
        + mm_itemsize * n_out * tsx * n_in                  # xw cache
        + 4 * tsx * _round_up(max(n_out, 1), 128)           # col cache (lane-padded)
        + 4 * tsx * (J + tsy)                               # f32 intermediates
    )
    try:
        vmem_cap = int(pltpu.get_tpu_info().vmem_capacity_bytes)
    except Exception:
        vmem_cap = 64 << 20
    # Leave >=16 MiB headroom for compiler-internal scratch (matters on v7x's
    # 64 MiB per-TC VMEM; on v5e/v6e this permits ~112 MiB for larger tiles).
    vmem_ceiling = max(vmem_cap - (16 << 20), vmem_cap // 2)
    vmem_limit = int(min(max(2 * blk_bytes, 32 << 20), vmem_ceiling))

    cost = pl.CostEstimate(
        # xw (+ fused bias_y column) runs once per (b, i); 2nd matmul per step.
        flops=2 * B * n_out * n_in * (Sx_pad * J + Sx_pad * Sy_pad),
        transcendentals=0,
        bytes_accessed=(
            itemsize * B * Sx_pad * n_in                    # x: once per (b, i)
            + itemsize * B * gx * Sy_pad * n_in             # y: per (b, i, j)
            + itemsize * n_out * (n_in * J + J)             # weights: resident
            + out_itemsize * B * n_out * Sx_pad * Sy_pad    # output store
        ),
    )

    out = pl.pallas_call(
        kernel,
        out_shape=jax.ShapeDtypeStruct((B, n_out, Sx_pad, Sy_pad), out_dtype),
        grid_spec=pltpu.PrefetchScalarGridSpec(
            num_scalar_prefetch=0,
            grid=(B, gx, gy),
            in_specs=[
                pl.BlockSpec((pl.Squeezed(), tsx, n_in),
                             lambda b, i, j: (b, i, 0)),
                pl.BlockSpec((n_out, n_in, J),               # resident weights
                             lambda b, i, j: (0, 0, 0)),
                pl.BlockSpec((n_out, 1, J),                  # resident bias_x row
                             lambda b, i, j: (0, 0, 0)),
                pl.BlockSpec((pl.Squeezed(), tsy, n_in),
                             lambda b, i, j: (b, j, 0)),
            ],
            out_specs=pl.BlockSpec(
                (pl.Squeezed(), n_out, tsx, tsy),
                lambda b, i, j: (b, 0, i, j),
            ),
            scratch_shapes=[
                pltpu.VMEM((n_out, tsx, n_in), mm_dtype),    # xw cache
                pltpu.VMEM((tsx, n_out), jnp.float32),       # bias_y column cache
            ],
        ),
        compiler_params=pltpu.CompilerParams(
            # gy must stay "arbitrary": the xw cache spans that axis.
            dimension_semantics=("parallel", "parallel", "arbitrary"),
            vmem_limit_bytes=vmem_limit,
        ),
        cost_estimate=cost,
    )(x, w_main, w_row, y)

    if Sx_pad != Sx or Sy_pad != Sy:
        out = out[:, :, :Sx, :Sy]
    # torch .squeeze(1): drop the n_out axis only if it has size 1.
    if n_out == 1:
        out = jnp.squeeze(out, axis=1)
    return out


def _reference(x, y, weight, bias_x, bias_y):
    xa = jnp.concatenate([x, jnp.ones_like(x[..., :1])], axis=-1) if bias_x else x
    ya = jnp.concatenate([y, jnp.ones_like(y[..., :1])], axis=-1) if bias_y else y
    s = jnp.einsum("bxi,oij,byj->boxy", xa, weight, ya)
    if weight.shape[0] == 1:
        s = jnp.squeeze(s, axis=1)
    return s


if __name__ == "__main__":
    key = jax.random.PRNGKey(0)

    configs = [
        # Module default: bias_x=True, bias_y=False, n_out=1.
        dict(n_in=32, n_out=1, bias_x=True, bias_y=False, B=2, Sx=8, Sy=8),
        # Exercise bias_y fusion, n_out > 1, and the per-channel caches.
        dict(n_in=32, n_out=3, bias_x=True, bias_y=True, B=2, Sx=16, Sy=16),
    ]

    for cfg in configs:
        key, kx, ky, kw = jax.random.split(key, 4)
        x = jax.random.normal(kx, (cfg["B"], cfg["Sx"], cfg["n_in"]), dtype=jnp.float32)
        y = jax.random.normal(ky, (cfg["B"], cfg["Sy"], cfg["n_in"]), dtype=jnp.float32)
        # The PyTorch module zero-initializes the weight; use a deterministic
        # non-zero init here so the kernel computes something meaningful.
        weight = 0.02 * jax.random.normal(
            kw,
            (cfg["n_out"],
             cfg["n_in"] + int(cfg["bias_x"]),
             cfg["n_in"] + int(cfg["bias_y"])),
            dtype=jnp.float32,
        )

        out = biaffine_forward(x, y, weight,
                               bias_x=cfg["bias_x"], bias_y=cfg["bias_y"])
        out = jax.block_until_ready(out)

        ref = _reference(x, y, weight, cfg["bias_x"], cfg["bias_y"])
        assert out.shape == ref.shape, (out.shape, ref.shape)
        assert jnp.allclose(out, ref, atol=1e-4, rtol=1e-4), cfg

    print("KERNEL_OK")
</pallas_src>

<mosaic_0001>
module attributes {stable_mosaic.version = 11 : i64} {
  func.func @_biaffine_kernel(%arg0: i32, %arg1: i32, %arg2: i32, %arg3: memref<1x8x32xf32, #tpu.memory_space<vmem>>, %arg4: memref<1x32x32xf32, #tpu.memory_space<vmem>>, %arg5: memref<1x1x32xf32, #tpu.memory_space<vmem>>, %arg6: memref<1x8x32xf32, #tpu.memory_space<vmem>>, %arg7: memref<1x1x8x8xf32, #tpu.memory_space<vmem>>, %arg8: memref<1x8x32xf32, #tpu.memory_space<vmem>>, %arg9: memref<8x1xf32, #tpu.memory_space<vmem>>) attributes {dimension_semantics = [#tpu.dimension_semantics<parallel>, #tpu.dimension_semantics<parallel>, #tpu.dimension_semantics<arbitrary>], iteration_bounds = array<i64: 2, 1, 1>, scalar_prefetch = 0 : i64, scratch_operands = 2 : i64, tpu.core_type = #tpu.core_type<tc>, window_params = [{transform_indices = @transform_0, window_bounds = array<i64: 1, 8, 32>}, {pipeline_mode = #tpu.pipeline_mode<synchronous>, transform_indices = @transform_1, window_bounds = array<i64: 1, 32, 32>}, {pipeline_mode = #tpu.pipeline_mode<synchronous>, transform_indices = @transform_2, window_bounds = array<i64: 1, 1, 32>}, {transform_indices = @transform_3, window_bounds = array<i64: 1, 8, 32>}, {transform_indices = @transform_4, window_bounds = array<i64: 1, 1, 8, 8>}]} {
    %c0_i32 = arith.constant 0 : i32
    %0 = arith.cmpi eq, %arg2, %c0_i32 : i32
    %1 = arith.extui %0 : i1 to i32
    %c0_i32_0 = arith.constant 0 : i32
    %2 = arith.cmpi ne, %1, %c0_i32_0 : i32
    scf.if %2 {
      %c0_10 = arith.constant 0 : index
      %c0_11 = arith.constant 0 : index
      %c0_12 = arith.constant 0 : index
      %11 = vector.load %arg3[%c0_10, %c0_11, %c0_12] : memref<1x8x32xf32, #tpu.memory_space<vmem>>, vector<1x8x32xf32>
      %12 = vector.shape_cast %11 : vector<1x8x32xf32> to vector<8x32xf32>
      %c0_13 = arith.constant 0 : index
      %c0_14 = arith.constant 0 : index
      %c0_15 = arith.constant 0 : index
      %13 = vector.load %arg4[%c0_13, %c0_14, %c0_15] : memref<1x32x32xf32, #tpu.memory_space<vmem>>, vector<1x32x32xf32>
      %14 = vector.shape_cast %13 : vector<1x32x32xf32> to vector<32x32xf32>
      %cst_16 = arith.constant dense<0.000000e+00> : vector<8x32xf32>
      %15 = tpu.matmul %12, %14, %cst_16 {dimension_numbers = #tpu.dot_dimension_numbers<[1], [0], [0], [1], [0, 0, 1, 1], [], []>} : vector<8x32xf32>, vector<32x32xf32>, vector<8x32xf32> -> vector<8x32xf32>
      %c0_17 = arith.constant 0 : index
      %c0_18 = arith.constant 0 : index
      %c0_19 = arith.constant 0 : index
      %16 = vector.load %arg5[%c0_17, %c0_18, %c0_19] : memref<1x1x32xf32, #tpu.memory_space<vmem>>, vector<1x1x32xf32>
      %17 = vector.shape_cast %16 : vector<1x1x32xf32> to vector<1x32xf32>
      %18 = vector.broadcast %17 : vector<1x32xf32> to vector<8x32xf32>
      %19 = arith.addf %15, %18 : vector<8x32xf32>
      %c0_20 = arith.constant 0 : index
      %c0_21 = arith.constant 0 : index
      %c0_22 = arith.constant 0 : index
      %20 = vector.load %arg8[%c0_20, %c0_21, %c0_22] : memref<1x8x32xf32, #tpu.memory_space<vmem>>, vector<1x8x32xf32>
      %21 = vector.shape_cast %20 : vector<1x8x32xf32> to vector<8x32xf32>
      %22 = vector.shape_cast %19 : vector<8x32xf32> to vector<1x8x32xf32>
      tpu.vector_store %arg8[%c0_20, %c0_21, %c0_22], %22 {strides = array<i32>} : memref<1x8x32xf32, #tpu.memory_space<vmem>>, vector<1x8x32xf32>,
    } else {
    }
    %c0 = arith.constant 0 : index
    %c0_1 = arith.constant 0 : index
    %c0_2 = arith.constant 0 : index
    %3 = vector.load %arg6[%c0, %c0_1, %c0_2] : memref<1x8x32xf32, #tpu.memory_space<vmem>>, vector<1x8x32xf32>
    %4 = vector.shape_cast %3 : vector<1x8x32xf32> to vector<8x32xf32>
    %c0_3 = arith.constant 0 : index
    %c0_4 = arith.constant 0 : index
    %c0_5 = arith.constant 0 : index
    %5 = vector.load %arg8[%c0_3, %c0_4, %c0_5] : memref<1x8x32xf32, #tpu.memory_space<vmem>>, vector<1x8x32xf32>
    %6 = vector.shape_cast %5 : vector<1x8x32xf32> to vector<8x32xf32>
    %cst = arith.constant dense<0.000000e+00> : vector<8x8xf32>
    %7 = tpu.matmul %6, %4, %cst {dimension_numbers = #tpu.dot_dimension_numbers<[1], [1], [0], [0], [0, 0, 1, 0], [], []>} : vector<8x32xf32>, vector<8x32xf32>, vector<8x8xf32> -> vector<8x8xf32>
    %c0_6 = arith.constant 0 : index
    %c0_7 = arith.constant 0 : index
    %c0_8 = arith.constant 0 : index
    %c0_9 = arith.constant 0 : index
    %8 = vector.load %arg7[%c0_6, %c0_7, %c0_8, %c0_9] : memref<1x1x8x8xf32, #tpu.memory_space<vmem>>, vector<1x1x8x8xf32>
    %9 = vector.shape_cast %8 : vector<1x1x8x8xf32> to vector<8x8xf32>
    %10 = vector.shape_cast %7 : vector<8x8xf32> to vector<1x1x8x8xf32>
    tpu.vector_store %arg7[%c0_6, %c0_7, %c0_8, %c0_9], %10 {strides = array<i32>} : memref<1x1x8x8xf32, #tpu.memory_space<vmem>>, vector<1x1x8x8xf32>,
    return
  }
  func.func @transform_0(%arg0: i32, %arg1: i32, %arg2: i32) -> (i32, i32, i32) {
    %c0_i32 = arith.constant 0 : i32
    %c0_i32_0 = arith.constant 0 : i32
    return %arg0, %arg1, %c0_i32 : i32, i32, i32
  }
  func.func @transform_1(%arg0: i32, %arg1: i32, %arg2: i32) -> (i32, i32, i32) {
    %c0_i32 = arith.constant 0 : i32
    %c0_i32_0 = arith.constant 0 : i32
    %c0_i32_1 = arith.constant 0 : i32
    %c0_i32_2 = arith.constant 0 : i32
    return %c0_i32, %c0_i32_0, %c0_i32_1 : i32, i32, i32
  }
  func.func @transform_2(%arg0: i32, %arg1: i32, %arg2: i32) -> (i32, i32, i32) {
    %c0_i32 = arith.constant 0 : i32
    %c0_i32_0 = arith.constant 0 : i32
    %c0_i32_1 = arith.constant 0 : i32
    %c0_i32_2 = arith.constant 0 : i32
    return %c0_i32, %c0_i32_0, %c0_i32_1 : i32, i32, i32
  }
  func.func @transform_3(%arg0: i32, %arg1: i32, %arg2: i32) -> (i32, i32, i32) {
    %c0_i32 = arith.constant 0 : i32
    %c0_i32_0 = arith.constant 0 : i32
    return %arg0, %arg2, %c0_i32 : i32, i32, i32
  }
  func.func @transform_4(%arg0: i32, %arg1: i32, %arg2: i32) -> (i32, i32, i32, i32) {
    %c0_i32 = arith.constant 0 : i32
    %c0_i32_0 = arith.constant 0 : i32
    return %arg0, %c0_i32, %arg1, %arg2 : i32, i32, i32, i32
  }
}

</mosaic_0001>

<bundles_post_ra>
// kernel: tpu_custom_call.1
= control target key start
LH: loop header
LB: loop body
LE: loop exit
PB: predicated region body
PF: predicated region fallthrough
CT: control target
= control target key end

     0   :  { %9 = vsyncpa [#allocation5], 0  ;;  %s984_s0 = inlined_call_operand.hbm [shape: f32[2,8,32], index: 0, kind: input, shape index: {}]   ;;  %s985_s1 = inlined_call_operand.hbm [shape: f32[1,32,32], index: 1, kind: input, shape index: {}]   ;;  %s986_s2 = inlined_call_operand.vmem [shape: f32[1,1,32], index: 2, kind: input, shape index: {}]   ;;  %s987_s3 = inlined_call_operand.hbm [shape: f32[2,8,32], index: 3, kind: input, shape index: {}]   ;;  %s988_s4 = inlined_call_operand.hbm [shape: f32[2,1,8,8], index: 4, kind: output, shape index: {}]  }
   0x1   :  { %11 = vsyncpa [#allocation5 + $0x1], 0 }
   0x2   :  { %12 = vsyncpa [#allocation8], 0 }
   0x3   :  { %13 = vsyncpa [#allocation6], 0 }
   0x4   :  { %15 = vsyncpa [#allocation6 + $0x1], 0  ;;  %s811_s15 = smov 0   ;;  %s813_s16 = smov 0  }
   0x5   :  { %s815_s17 = smov 0   ;;  %s817_s18 = smov 0  }
   0x6   :  { %s819_s19 = smov 0   ;;  %s821_s20 = smov 0  }
   0x7 LB: > { %s842_s21 = sadd.s32 4294967295, %s781_s20   ;;  %s500_s22 = sadd.s32 4294967294, %s781_s20   ;;  %s781_s20 = sphi %s821_s20, %s21_s20   ;;  %s777_s19 = sphi %s819_s19, %s999_s19   ;;  %s773_s18 = sphi %s817_s18, %s998_s18   ;;  %s769_s17 = sphi %s815_s17, %s997_s17   ;;  %s765_s16 = sphi %s813_s16, %s996_s16   ;;  %s761_s15 = sphi %s811_s15, %s995_s15  }
   0x8   : > { %s40_s23 = sadd.s32 1, %s777_s19  ;;  %s49_s24 = sadd.s32 1, %s769_s17 }
   0x9   : > { %p42_p0 = scmp.ge.s32.totalorder %s40_s23, 2  ;;  %p56_p1 = scmp.ne.s32.totalorder %s769_s17, %s765_s16 }
   0xa   : > { %p57_p2 = scmp.eq.s32.totalorder %s781_s20, 0  ;;  %p62_p3 = scmp.ne.s32.totalorder %s765_s16, %s761_s15 }
   0xb   : > { %s1001_s23 = smov (%p42_p0, %s40_s23), 0  ;;  %p160_p5 = scmp.eq.s32.totalorder %s842_s21, 1 }
   0xc   : > { %p854_p4 = por %p57_p2, %p56_p1  ;;  %s44_s26 = ssub.s32 %s777_s19, %s1001_s23 }
   0xd   : > { %p166_p6 = scmp.eq.s32.totalorder %s500_s22, 1  ;;  %p47_p7 = scmp.eq.s32.totalorder %s44_s26, 0 }
   0xe   : > { %p861_p8 = por %p160_p5, %p56_p1  ;;  %p503_p10 = scmp.ge.s32.totalorder %s781_s20, 2 }
   0xf   : > { %p868_p9 = por %p166_p6, %p62_p3  ;;  %p546_p11 = scmp.lt.s32.totalorder %s781_s20, 2 }
  0x10   : > { %s873_s29 = scalar_select %p47_p7, %s769_s17, %s49_s24  }
  0x11   : > { %s203_s30 = sand.u32 1, %s781_s20   ;;  %s205_s5 = sand.u32 1, %s769_s17  }
  0x12   : > { %s504_s6 = sshll.u32 %s205_s5, 3  ;;  %s505_s7 = sshll.u32 %s777_s19, 3 }
  0x13   : > { %s212_s10 = scalar_lea.hbm %s984_s0, %s505_s7  ;;  %s207_s11 = scalar_lea.vmem [#allocation4], %s504_s6 }
  0x14   : > { %s216_s12 = sshll.u32 %s207_s11, 4  ;;  %s214_s13 = sshll.u32 %s212_s10, 4  ;;  %s217_s12 = int_to_ptr.vmem [resolvable:$true] %s216_s12  ;;  %s215_s13 = int_to_ptr.hbm [resolvable:$true] %s214_s13 }
  0x15   : > { %p885_p12 = pnand %p546_p11, %p854_p4  ;;  %s232_s26 = scalar_lea.hbm %s987_s3, %s505_s7 }
  0x16   : > { %s204_s5 = scalar_lea.sflag [#allocation5], %s203_s30  ;;  %p63_p13 = scmp.eq.s32.totalorder %s842_s21, 0 }
  0x17   : > { %537 = dma.hbm_to_vmem [thread:$0]  (!%p885_p12), %s215_s13, 128, %s217_s12, %s204_s5  }
  0x18   : > { %p501_p0 = scmp.ge.s32.totalorder %s781_s20, 1  ;;  %p173_p1 = scmp.lt.s32.totalorder %s781_s20, 3 }
  0x19   : > { %p902_p2 = por %p63_p13, %p62_p3  ;;  %s184_s10 = sshll.u32 %s985_s1, 4  ;;  %s185_s10 = int_to_ptr.hbm [resolvable:$true] %s184_s10 }
  0x1a   : > { %p909_p4 = pnand %p501_p0, %p173_p1  ;;  %s783_s30 = smov [#allocation7]  }
  0x1b   : > { %s186_s7 = sshll.u32 %s783_s30, 4  ;;  %s234_s12 = sshll.u32 %s232_s26, 4  ;;  %s187_s7 = int_to_ptr.vmem [resolvable:$true] %s186_s7  ;;  %s235_s12 = int_to_ptr.hbm [resolvable:$true] %s234_s12 }
  0x1c   : > { %p530_p5 = pneg %p909_p4  ;;  %s227_s13 = scalar_lea.vmem [#allocation9], %s504_s6 }
  0x1d   : > { %s236_s22 = sshll.u32 %s227_s13, 4  ;;  %s784_s24 = smov 128   ;;  %s237_s22 = int_to_ptr.vmem [resolvable:$true] %s236_s22 }
  0x1e   : > { %p531_p3 = pnand %p530_p5, %p63_p13  ;;  %s785_s8 = smov 8  }
  0x1f   : > { %540 = dma.hbm_to_vmem [thread:$0]  (!%p885_p12), %s235_s12, 128, %s237_s22, %s204_s5  }
  0x20   : > { %533 = dma.hbm_to_vmem [thread:$0]  (!%p531_p3), %s185_s10, 512, %s187_s7, [#allocation8], %s784_s24, %s784_s24, %s785_s8  }
  0x21   : > { %245 = sbr.rel (%p909_p4) target bundleno = 316 (0x13c), region = 36  ;;  %s247_s9 = sand.u32 (!%p909_p4), 1, %s842_s21  }
  0x22   : > { %s249_s30 = sand.u32 (!%p909_p4), 1, %s765_s16   ;;  %s248_s6 = scalar_lea.sflag (!%p909_p4), [#allocation5], %s247_s9 }
  0x23   : > { %s925_s26 = sshll.u32 (!%p909_p4), %s249_s30, 3 }
  0x24   : > { %s251_s13 = scalar_lea.vmem (!%p909_p4), [#allocation4], %s925_s26 }
  0x26   : > { %744 = dma.done.wait (%p902_p2), %s248_s6, 128  }
  0x27   : > { %746 = vsyncadd (%p902_p2), %s248_s6, 4294967168 }
  0x28   : > { %748 = dma.done.wait (%p63_p13), [#allocation8], 512  }
  0x29   : > { %750 = vsyncadd (%p63_p13), [#allocation8], 4294966784  ;;  %s266_s14 = scalar_lea.vmem [#allocation9], %s925_s26 }
  0x2a   : > { %752 = dma.done.wait (%p902_p2), %s248_s6, 128  }
  0x2b   : > { %754 = vsyncadd (%p902_p2), %s248_s6, 4294967168  ;;  %v305_v0 = vld [vmem:[#allocation7 + $0x18] sm:$0xff]  ;;  %v304_v1 = vld [vmem:[#allocation7 + $0x10] sm:$0xff]  ;;  %vm310_vm0 = vcmask 261120   ;;  %s517_s25 = sshll.u32 %s773_s18, 3  ;;  %s296_s12 = scalar_lea.vmem [#allocation10], %s925_s26 }
  0x2c   : > { %326 = vmatpush.msra.mxu0 %v305_v0  ;;  %v303_v2 = vld [vmem:[#allocation7 + $0x8] sm:$0xff]  ;;  %v302_v3 = vld [vmem:[#allocation7] sm:$0xff]  ;;  %v301_v4 = vld [vmem:[%s251_s13] sm:$0xff]  ;;  %s379_s7 = scalar_lea.hbm %s988_s4, %s517_s25  ;;  %s381_s22 = sshll.u32 %s296_s12, 4  ;;  %vm364_vm1 = vcmask 64512   ;;  %s382_s22 = int_to_ptr.vmem [resolvable:$true] %s381_s22 }
  0x2d   : > { %v335_v5 = vld [vmem:[%s266_s14] sm:$0xff]  ;;  %s383_s24 = sshll.u32 %s379_s7, 4  ;;  %s367_s8 = scalar_lea.sflag [#allocation6], %s249_s30  ;;  %s384_s24 = int_to_ptr.hbm [resolvable:$true] %s383_s24 }
  0x2e   : > { %327 = vmatpush.msra.mxu0 %v304_v1  ;;  %514 = vmatpush.xpose.msk.msra.mxu1 %vm310_vm0, %v335_v5  ;;  %v600_v6 = vld [vmem:[%s986_s2] ss:$0 sm:$0xff]  ;;  %s705_s9 = sshra.s32 %s384_s24, 4  ;;  %s711_s26 = scalar_lea.hbm %s988_s4, 16  ;;  %s706_s9 = int_to_ptr.hbm [resolvable:$true] %s705_s9 }
  0x2f   : > { %s707_s6 = scalar_lea.hbm %s706_s9, 8  ;;  %p712_p12 = scmp.lt.s32.totalorder %s706_s9, %s988_s4 }
  0x30   : > { %328 = vmatpush.msra.mxu0 %v303_v2  ;;  %p708_p6 = scmp.ne.s32.totalorder %s706_s9, %s707_s6  ;;  %p713_p13 = scmp.lt.s32.totalorder %s711_s26, %s707_s6 }
  0x32   : > { %329 = vmatpush.msra.mxu0 %v302_v3  ;;  %p709_p7 = pnand %p708_p6, %p861_p8  ;;  %p714_p0 = por %p713_p13, %p712_p12 }
  0x33   : > { %513 = vmatmul.msk.f32.vlgmr.msra.gmra.mxu0 %vm310_vm0, %v301_v4 }
  0x34   : > { %p710_p11 = pneg %p709_p7 }
  0x36   : > { %p715_p1 = pnand %p714_p0, %p710_p11 }
  0xb0   : > { %v331_v7 = vpop.f32.mrf.mxu0 }
  0xb1   : > { %v332_v8 = vadd.f32 %v600_v6, %v331_v7 }
  0xb3   : > { %334 = vst.msk [vmem:[#allocation2] sm:$0xff] %vm310_vm0, %v332_v8 }
  0xba   : > { %v336_v9 = vld [vmem:[#allocation2] sm:$0xff] }
  0xbb   : > { %515 = vmatmul.msk.f32.vlgmr.msra.gmra.mxu1 %vm310_vm0, %v336_v9 }
 0x138   : > { %v361_v10 = vpop.f32.mrf.mxu1 }
 0x139   : > { %365 = vst.msk [vmem:[%s296_s12] sm:$0xff] %vm364_vm1, %v361_v10 }
 0x13a   : > { %718 = shalt.err (!%p715_p1)
}
 0x13b   : > { %528 = dma.vmem_to_hbm [thread:$0]  (%p861_p8), %s382_s22, 128, %s384_s24, %s367_s8  }
 0x13c PF: > { %s395_s30 = sand.u32 1, %s761_s15   ;;  %p542_p2 = pnand %p503_p10, %p868_p9 }
 0x13d   : > { %s396_s5 = scalar_lea.sflag [#allocation6], %s395_s30 }
 0x13e   : > { %p543_p4 = pneg %p542_p2 }
 0x140   : > { %756 = dma.done.wait (%p543_p4), %s396_s5, 128  }
 0x141   : > { %758 = vsyncadd (%p543_p4), %s396_s5, 4294967168  ;;  %s21_s20 = sadd.s32 1, %s781_s20   ;;  %s995_s15 = smov %s765_s16 }
 0x142   : > { %p18_p5 = scmp.ge.s32.totalorder %s21_s20, 4   ;;  %s996_s16 = smov %s769_s17 }
 0x143   : > { %s997_s17 = smov %s873_s29  ;;  %s998_s18 = smov %s777_s19 }
 0x144   : > { %s999_s19 = smov %s1001_s23  ;;  %20 = sbr.rel (!%p18_p5) target bundleno = 7 (0x7), region = 100 }
 0x149   :  { %402 = vsyncpa [#allocation5], 1 }
 0x14a   :  { %404 = vsyncpa [#allocation5 + $0x1], 1 }
 0x14b   :  { %405 = vsyncpa [#allocation8], 1 }
 0x14c   :  { %406 = vsyncpa [#allocation6], 1 }
 0x14d   :  { %408 = vsyncpa [#allocation6 + $0x1], 1 }

</bundles_post_ra>
